<compile_context>
chip_gen: v7x
topology: tpu7x:2x2x1
jax: 0.10.0
libtpu: 0.0.40
codegen_flags: <defaults>
</compile_context>

<pallas_src>
import functools

import jax
import jax.numpy as jnp
from jax.experimental import pallas as pl
from jax.experimental.pallas import tpu as pltpu

_MAX_BLOCK_BATCH = 1024  # upper bound on batch rows per grid step


def _round_up(n, m):
    return ((n + m - 1) // m) * m


@functools.lru_cache(maxsize=None)
def _vmem_limit_bytes():
    """Generation-aware scoped-VMEM limit: ~75% of physical per-core VMEM."""
    try:
        cap = int(pltpu.get_tpu_info().vmem_capacity_bytes)
        if cap <= 0:
            raise ValueError("bad vmem capacity")
    except Exception:  # noqa: BLE001 - fall back to the smallest (v7x) budget
        cap = 64 * 1024 * 1024
    # v7x (64 MiB phys) -> 48 MiB ; v5e/v6e (128 MiB phys) -> 96 MiB (cap 112).
    return min(int(cap * 0.75), 112 * 1024 * 1024)


def _choose_tile(B, IN_p, OUT_p, vmem_limit):
    """Pick (TB, B_p): big enough to amortize per-step cost, small enough to
    fit VMEM double-buffering, and with low batch tail-padding waste."""
    H = 128
    # Resident weights/biases (worst case: default 2-deep buffering).
    weight_bytes = 2 * (IN_p * H * 2 + H * 4 + H * OUT_p * 2 + OUT_p * 4)
    # Double-buffered x tile (<=4 B/elem worst case) + f32 out tile.
    per_row = 2 * (4 * IN_p + 4 * OUT_p)
    budget = int(vmem_limit * 0.8) - weight_bytes
    tb_cap = max(16, budget // per_row)
    tb_cap = min(tb_cap, _MAX_BLOCK_BATCH)

    cands = []
    t = 16
    while t <= tb_cap:
        cands.append(t)
        t *= 2
    if not cands:
        cands = [16]

    # Largest tile keeping batch padding waste <= 12.5% (fallback: smallest).
    tb = cands[0]
    for c in cands:
        if (_round_up(B, c) - B) <= 0.125 * B:
            tb = c
    B_p = _round_up(B, tb)

    # Keep >=2 grid steps when the batch is big enough (v7x has 2 TCs).
    while B_p // tb == 1 and tb >= 512:
        tb //= 2
        B_p = _round_up(B, tb)
    return tb, B_p


def linear_classifier_kernel(x_ref, w1_ref, b1_ref, w2_ref, b2_ref, o_ref):
    # In-kernel bf16 cast (VPU; free in the mem-bound regime) lets the wrapper
    # skip the padded x copy on aligned inputs.
    x = x_ref[...].astype(jnp.bfloat16)
    # fc1: bf16 MXU matmul, f32 accumulate, f32 bias.
    h = jnp.dot(x, w1_ref[...], preferred_element_type=jnp.float32) + b1_ref[...]
    # fc2: bf16 MXU matmul, f32 accumulate, f32 bias.
    logits = jnp.dot(h.astype(jnp.bfloat16), w2_ref[...],
                     preferred_element_type=jnp.float32) + b2_ref[...]
    # Numerically stable softmax over the class dim.  Padded class columns
    # carry a -1e30 bias, so exp(...) underflows to exactly 0 for them.
    m = jnp.max(logits, axis=-1, keepdims=True)
    e = jnp.exp(logits - m)
    s = jnp.sum(e, axis=-1, keepdims=True)
    o_ref[...] = (e * pl.reciprocal(s, approx=True)).astype(o_ref.dtype)


def prepare_params(w1, b1, w2, b2):
    """Pad + cast weights ONCE (hoisted out of the per-call path).

    w1: [IN, 128]; b1: [1, 128]; w2: [128, OUT]; b2: [1, OUT] (or [OUT]).
    """
    IN, H = w1.shape
    OUT = w2.shape[1]
    IN_p = _round_up(IN, 128)
    OUT_p = _round_up(OUT, 128)

    w1_p = jnp.zeros((IN_p, H), jnp.bfloat16).at[:IN, :].set(w1.astype(jnp.bfloat16))
    b1_p = b1.reshape(1, H).astype(jnp.float32)
    w2_p = jnp.zeros((H, OUT_p), jnp.bfloat16).at[:, :OUT].set(w2.astype(jnp.bfloat16))
    # Hugely negative f32 bias in padded class columns -> softmax weight == 0.
    b2_p = jnp.full((1, OUT_p), -1e30, jnp.float32).at[0, :OUT].set(
        b2.reshape(-1).astype(jnp.float32))
    return {"w1": w1_p, "b1": b1_p, "w2": w2_p, "b2": b2_p, "out_features": OUT}


@functools.partial(jax.jit, static_argnames=("out_features",))
def _apply(x, w1_p, b1_p, w2_p, b2_p, *, out_features):
    B, IN = x.shape
    IN_p, H = w1_p.shape
    OUT_p = w2_p.shape[1]

    vmem_limit = _vmem_limit_bytes()
    TB, B_p = _choose_tile(B, IN_p, OUT_p, vmem_limit)

    if B_p == B and IN_p == IN:
        # Aligned fast path: no materialized padded copy of x; the kernel casts
        # to bf16 itself.  Saves an extra read+write of x in HBM.
        x_in = x
    else:
        x_in = jnp.zeros((B_p, IN_p), jnp.bfloat16).at[:B, :IN].set(
            x.astype(jnp.bfloat16))

    grid = (B_p // TB,)

    cost = pl.CostEstimate(
        flops=2 * B_p * (IN_p * H + H * OUT_p),
        transcendentals=B_p * OUT_p,
        bytes_accessed=B_p * IN_p * x_in.dtype.itemsize
        + (IN_p * H + H * OUT_p) * 2 + (H + OUT_p) * 4
        + B_p * OUT_p * 4,
    )

    out = pl.pallas_call(
        linear_classifier_kernel,
        out_shape=jax.ShapeDtypeStruct((B_p, OUT_p), jnp.float32),
        grid_spec=pl.GridSpec(
            grid=grid,
            in_specs=[
                pl.BlockSpec((TB, IN_p), lambda i: (i, 0)),    # x tile (streamed)
                pl.BlockSpec((IN_p, H), lambda i: (0, 0)),     # w1 (VMEM-resident)
                pl.BlockSpec((1, H), lambda i: (0, 0)),        # b1 (resident)
                pl.BlockSpec((H, OUT_p), lambda i: (0, 0)),    # w2 (resident)
                pl.BlockSpec((1, OUT_p), lambda i: (0, 0)),    # b2 (resident)
            ],
            out_specs=pl.BlockSpec((TB, OUT_p), lambda i: (i, 0)),
        ),
        compiler_params=pltpu.CompilerParams(
            dimension_semantics=("parallel",),
            vmem_limit_bytes=vmem_limit,
        ),
        cost_estimate=cost,
    )(x_in, w1_p, b1_p, w2_p, b2_p)

    return out[:B, :out_features]


def linear_classifier(x, params):
    """x: [B, IN]; params: output of prepare_params()."""
    return _apply(x, params["w1"], params["b1"], params["w2"], params["b2"],
                  out_features=params["out_features"])


def init_params(key, in_features, hidden, out_features):
    # PyTorch-style init: U(-1/sqrt(fan_in), 1/sqrt(fan_in))
    k1, k2, k3, k4 = jax.random.split(key, 4)
    lim1 = 1.0 / jnp.sqrt(in_features)
    lim2 = 1.0 / jnp.sqrt(hidden)
    w1 = jax.random.uniform(k1, (in_features, hidden), jnp.float32, -lim1, lim1)
    b1 = jax.random.uniform(k2, (1, hidden), jnp.float32, -lim1, lim1)
    w2 = jax.random.uniform(k3, (hidden, out_features), jnp.float32, -lim2, lim2)
    b2 = jax.random.uniform(k4, (1, out_features), jnp.float32, -lim2, lim2)
    return w1, b1, w2, b2


def _reference(x, w1, b1, w2, b2):
    return jax.nn.softmax((x @ w1 + b1) @ w2 + b2, axis=-1)


if __name__ == "__main__":
    key = jax.random.PRNGKey(0)
    kx, kp, kx2, kp3, kx3 = jax.random.split(key, 5)

    batch, in_features, hidden, out_features = 8, 32, 128, 16
    x = jax.random.normal(kx, (batch, in_features), jnp.float32)
    w1, b1, w2, b2 = init_params(kp, in_features, hidden, out_features)
    params = prepare_params(w1, b1, w2, b2)   # hoisted: padded/cast once

    # Small batch (single grid step, padded batch + padded IN/OUT).
    out = jax.block_until_ready(linear_classifier(x, params))
    ref = _reference(x, w1, b1, w2, b2)
    assert out.shape == (batch, out_features)
    assert jnp.allclose(out, ref, atol=5e-3), float(jnp.max(jnp.abs(out - ref)))
    assert jnp.allclose(jnp.sum(out, axis=-1), 1.0, atol=1e-2)

    # Larger, non-aligned batch: multiple grid steps, low-waste tail padding.
    x2 = jax.random.normal(kx2, (300, in_features), jnp.float32)
    out2 = jax.block_until_ready(linear_classifier(x2, params))
    ref2 = _reference(x2, w1, b1, w2, b2)
    assert out2.shape == (300, out_features)
    assert jnp.allclose(out2, ref2, atol=5e-3), float(jnp.max(jnp.abs(out2 - ref2)))
    assert jnp.allclose(jnp.sum(out2, axis=-1), 1.0, atol=1e-2)

    # Aligned case (B multiple of tile, IN multiple of 128): exercises the
    # no-copy fast path where x is passed straight to the kernel as f32.
    w1c, b1c, w2c, b2c = init_params(kp3, 128, hidden, out_features)
    params3 = prepare_params(w1c, b1c, w2c, b2c)
    x3 = jax.random.normal(kx3, (64, 128), jnp.float32)
    out3 = jax.block_until_ready(linear_classifier(x3, params3))
    ref3 = _reference(x3, w1c, b1c, w2c, b2c)
    assert out3.shape == (64, out_features)
    assert jnp.allclose(out3, ref3, atol=5e-3), float(jnp.max(jnp.abs(out3 - ref3)))
    assert jnp.allclose(jnp.sum(out3, axis=-1), 1.0, atol=1e-2)

    print("KERNEL_OK")
</pallas_src>

<mosaic_0001>
module attributes {stable_mosaic.version = 11 : i64} {
  func.func @linear_classifier_kernel(%arg0: i32, %arg1: memref<16x128xbf16, #tpu.memory_space<vmem>>, %arg2: memref<128x128xbf16, #tpu.memory_space<vmem>>, %arg3: memref<1x128xf32, #tpu.memory_space<vmem>>, %arg4: memref<128x128xbf16, #tpu.memory_space<vmem>>, %arg5: memref<1x128xf32, #tpu.memory_space<vmem>>, %arg6: memref<16x128xf32, #tpu.memory_space<vmem>>) attributes {dimension_semantics = [#tpu.dimension_semantics<parallel>], iteration_bounds = array<i64: 1>, scalar_prefetch = 0 : i64, scratch_operands = 0 : i64, tpu.core_type = #tpu.core_type<tc>, window_params = [{transform_indices = @transform_0, window_bounds = array<i64: 16, 128>}, {pipeline_mode = #tpu.pipeline_mode<synchronous>, transform_indices = @transform_1, window_bounds = array<i64: 128, 128>}, {pipeline_mode = #tpu.pipeline_mode<synchronous>, transform_indices = @transform_2, window_bounds = array<i64: 1, 128>}, {pipeline_mode = #tpu.pipeline_mode<synchronous>, transform_indices = @transform_3, window_bounds = array<i64: 128, 128>}, {pipeline_mode = #tpu.pipeline_mode<synchronous>, transform_indices = @transform_4, window_bounds = array<i64: 1, 128>}, {transform_indices = @transform_5, window_bounds = array<i64: 16, 128>}]} {
    %c0 = arith.constant 0 : index
    %c0_0 = arith.constant 0 : index
    %0 = vector.load %arg1[%c0, %c0_0] : memref<16x128xbf16, #tpu.memory_space<vmem>>, vector<16x128xbf16>
    %c0_1 = arith.constant 0 : index
    %c0_2 = arith.constant 0 : index
    %1 = vector.load %arg2[%c0_1, %c0_2] : memref<128x128xbf16, #tpu.memory_space<vmem>>, vector<128x128xbf16>
    %cst = arith.constant dense<0.000000e+00> : vector<16x128xf32>
    %2 = tpu.matmul %0, %1, %cst {dimension_numbers = #tpu.dot_dimension_numbers<[1], [0], [0], [1], [0, 0, 1, 1], [], []>} : vector<16x128xbf16>, vector<128x128xbf16>, vector<16x128xf32> -> vector<16x128xf32>
    %c0_3 = arith.constant 0 : index
    %c0_4 = arith.constant 0 : index
    %3 = vector.load %arg3[%c0_3, %c0_4] : memref<1x128xf32, #tpu.memory_space<vmem>>, vector<1x128xf32>
    %4 = vector.broadcast %3 : vector<1x128xf32> to vector<16x128xf32>
    %5 = arith.addf %2, %4 : vector<16x128xf32>
    %6 = arith.truncf %5 : vector<16x128xf32> to vector<16x128xbf16>
    %c0_5 = arith.constant 0 : index
    %c0_6 = arith.constant 0 : index
    %7 = vector.load %arg4[%c0_5, %c0_6] : memref<128x128xbf16, #tpu.memory_space<vmem>>, vector<128x128xbf16>
    %cst_7 = arith.constant dense<0.000000e+00> : vector<16x128xf32>
    %8 = tpu.matmul %6, %7, %cst_7 {dimension_numbers = #tpu.dot_dimension_numbers<[1], [0], [0], [1], [0, 0, 1, 1], [], []>} : vector<16x128xbf16>, vector<128x128xbf16>, vector<16x128xf32> -> vector<16x128xf32>
    %c0_8 = arith.constant 0 : index
    %c0_9 = arith.constant 0 : index
    %9 = vector.load %arg5[%c0_8, %c0_9] : memref<1x128xf32, #tpu.memory_space<vmem>>, vector<1x128xf32>
    %10 = vector.broadcast %9 : vector<1x128xf32> to vector<16x128xf32>
    %11 = arith.addf %8, %10 : vector<16x128xf32>
    %cst_10 = arith.constant dense<0xFF800000> : vector<16xf32>
    %12 = vector.multi_reduction <maximumf>, %11, %cst_10 [1] : vector<16x128xf32> to vector<16xf32>
    %13 = vector.shape_cast %12 : vector<16xf32> to vector<16x1xf32>
    %14 = vector.broadcast %13 : vector<16x1xf32> to vector<16x128xf32>
    %15 = arith.subf %11, %14 : vector<16x128xf32>
    %16 = math.exp %15 : vector<16x128xf32>
    %cst_11 = arith.constant dense<0.000000e+00> : vector<16xf32>
    %17 = vector.multi_reduction <add>, %16, %cst_11 [1] : vector<16x128xf32> to vector<16xf32>
    %18 = vector.shape_cast %17 : vector<16xf32> to vector<16x1xf32>
    %19 = tpu.reciprocal %18 {approx = true} : vector<16x1xf32> -> vector<16x1xf32>
    %20 = vector.broadcast %19 : vector<16x1xf32> to vector<16x128xf32>
    %21 = arith.mulf %16, %20 : vector<16x128xf32>
    %c0_12 = arith.constant 0 : index
    %c0_13 = arith.constant 0 : index
    %22 = vector.load %arg6[%c0_12, %c0_13] : memref<16x128xf32, #tpu.memory_space<vmem>>, vector<16x128xf32>
    tpu.vector_store %arg6[%c0_12, %c0_13], %21 {strides = array<i32>} : memref<16x128xf32, #tpu.memory_space<vmem>>, vector<16x128xf32>,
    return
  }
  func.func @transform_0(%arg0: i32) -> (i32, i32) {
    %c0_i32 = arith.constant 0 : i32
    %c0_i32_0 = arith.constant 0 : i32
    return %arg0, %c0_i32 : i32, i32
  }
  func.func @transform_1(%arg0: i32) -> (i32, i32) {
    %c0_i32 = arith.constant 0 : i32
    %c0_i32_0 = arith.constant 0 : i32
    %c0_i32_1 = arith.constant 0 : i32
    return %c0_i32, %c0_i32_0 : i32, i32
  }
  func.func @transform_2(%arg0: i32) -> (i32, i32) {
    %c0_i32 = arith.constant 0 : i32
    %c0_i32_0 = arith.constant 0 : i32
    %c0_i32_1 = arith.constant 0 : i32
    return %c0_i32, %c0_i32_0 : i32, i32
  }
  func.func @transform_3(%arg0: i32) -> (i32, i32) {
    %c0_i32 = arith.constant 0 : i32
    %c0_i32_0 = arith.constant 0 : i32
    %c0_i32_1 = arith.constant 0 : i32
    return %c0_i32, %c0_i32_0 : i32, i32
  }
  func.func @transform_4(%arg0: i32) -> (i32, i32) {
    %c0_i32 = arith.constant 0 : i32
    %c0_i32_0 = arith.constant 0 : i32
    %c0_i32_1 = arith.constant 0 : i32
    return %c0_i32, %c0_i32_0 : i32, i32
  }
  func.func @transform_5(%arg0: i32) -> (i32, i32) {
    %c0_i32 = arith.constant 0 : i32
    %c0_i32_0 = arith.constant 0 : i32
    return %arg0, %c0_i32 : i32, i32
  }
}

</mosaic_0001>

<bundles_post_ra>
// kernel: _apply.1
= control target key start
LH: loop header
LB: loop body
LE: loop exit
PB: predicated region body
PF: predicated region fallthrough
CT: control target
= control target key end

     0   :  { %10 = vsyncpa [#allocation3], 0  ;;  %s539_s0 = inlined_call_operand.vmem [shape: bf16[16,128], index: 0, kind: input, shape index: {}]   ;;  %s540_s1 = inlined_call_operand.hbm [shape: bf16[128,128], index: 1, kind: input, shape index: {}]   ;;  %s541_s2 = inlined_call_operand.vmem [shape: f32[1,128], index: 2, kind: input, shape index: {}]   ;;  %s542_s3 = inlined_call_operand.hbm [shape: bf16[128,128], index: 3, kind: input, shape index: {}]   ;;  %s543_s4 = inlined_call_operand.vmem [shape: f32[1,128], index: 4, kind: input, shape index: {}]   ;;  %s544_s5 = inlined_call_operand.vmem [shape: f32[16,128], index: 5, kind: output, shape index: {}]  }
   0x1   :  { %11 = vsyncpa [#allocation5], 0  ;;  %s464_s18 = smov [#allocation2]   ;;  %s416_s22 = scalar_lea.hbm %s540_s1, 1024 }
   0x2   :  { %s19_s19 = sshll.u32 %s464_s18, 4  ;;  %p417_p0 = scmp.ne.s32.totalorder %s540_s1, %s416_s22  ;;  %s20_s19 = int_to_ptr.vmem [resolvable:$true] %s19_s19 }
   0x3   :  { %p420_p1 = scmp.lt.u32.totalorder %s416_s22, %s540_s1 }
   0x5   :  { %p422_p2 = pnand %p420_p1, %p417_p0 }
   0x7   :  { %425 = shalt.err (!%p422_p2)
}
   0x8   :  { %s426_s27 = scalar_lea.vmem %s20_s19, 1024  ;;  %p431_p4 = scmp.lt.s32.totalorder %s20_s19, %s20_s19 }
   0x9   :  { %p427_p3 = scmp.ne.s32.totalorder %s20_s19, %s426_s27  ;;  %p432_p5 = scmp.lt.s32.totalorder %s426_s27, %s426_s27 }
   0xb   :  { %p433_p6 = por %p432_p5, %p431_p4 }
   0xd   :  { %p434_p7 = pnand %p433_p6, %p427_p3 }
   0xf   :  { %437 = shalt.err (!%p434_p7)
}
  0x10   :  { %s465_s28 = smov 64   ;;  %s466_s29 = smov 4  }
  0x11   :  { %25 = dma.hbm_to_vmem [thread:$0]  %s540_s1, 1024, %s20_s19, [#allocation3], %s465_s28, %s465_s28, %s466_s29  }
  0x12   :  { %s467_s7 = smov [#allocation4]   ;;  %s438_s11 = scalar_lea.hbm %s542_s3, 1024 }
  0x13   :  { %s33_s8 = sshll.u32 %s467_s7, 4  ;;  %p439_p8 = scmp.ne.s32.totalorder %s542_s3, %s438_s11  ;;  %s34_s8 = int_to_ptr.vmem [resolvable:$true] %s33_s8 }
  0x14   :  { %p442_p9 = scmp.lt.u32.totalorder %s438_s11, %s542_s3 }
  0x16   :  { %p444_p10 = pnand %p442_p9, %p439_p8 }
  0x18   :  { %447 = shalt.err (!%p444_p10)
}
  0x19   :  { %s448_s16 = scalar_lea.vmem %s34_s8, 1024  ;;  %p453_p12 = scmp.lt.s32.totalorder %s34_s8, %s34_s8 }
  0x1a   :  { %p449_p11 = scmp.ne.s32.totalorder %s34_s8, %s448_s16  ;;  %p454_p13 = scmp.lt.s32.totalorder %s448_s16, %s448_s16 }
  0x1c   :  { %p455_p0 = por %p454_p13, %p453_p12 }
  0x1e   :  { %p456_p1 = pnand %p455_p0, %p449_p11 }
  0x20   :  { %459 = shalt.err (!%p456_p1)
}
  0x21   :  { %39 = dma.hbm_to_vmem [thread:$0]  %s542_s3, 1024, %s34_s8, [#allocation5], %s465_s28, %s465_s28, %s466_s29  }
  0x22   :  { %460 = dma.done.wait [#allocation3], 1024  }
  0x23   :  { %461 = vsyncadd [#allocation3], 4294966272 }
  0x24   :  { %462 = dma.done.wait [#allocation5], 1024  }
  0x25   :  { %463 = vsyncadd [#allocation5], 4294966272  ;;  %v468_v0 = vmov 0.0   ;;  %vm469_vm0 = vmmov 0   ;;  %v391_v1 = vld [vmem:[#allocation2] sm:$0xff]   ;;  %v392_v2 = vld [vmem:[#allocation2 + $0x8] sm:$0xff]  }
  0x26   :  { %345 = vmatprep.subr.bf16.mxu0 %v468_v0  ;;  %361 = vmatprep.mubr.msk.bf16.mxu0 %vm469_vm0, %v468_v0  ;;  %v393_v3 = vld [vmem:[#allocation2 + $0x10] sm:$0xff]   ;;  %v400_v4 = vld [vmem:[#allocation4] sm:$0xff]   ;;  %v394_v5 = vld [vmem:[#allocation2 + $0x18] sm:$0xff]  }
  0x27   :  { %365 = vmatprep.subr.bf16.mxu1 %v468_v0  ;;  %381 = vmatprep.mubr.msk.bf16.mxu1 %vm469_vm0, %v468_v0  ;;  %v401_v6 = vld [vmem:[#allocation4 + $0x8] sm:$0xff]   ;;  %v395_v7 = vld [vmem:[#allocation2 + $0x20] sm:$0xff]   ;;  %v402_v8 = vld [vmem:[#allocation4 + $0x10] sm:$0xff]  }
  0x28   :  { %346 = vmatpush3.bf16.msra.mxu0 %v391_v1  ;;  %366 = vmatpush3.bf16.msra.mxu1 %v400_v4  ;;  %v396_v9 = vld [vmem:[#allocation2 + $0x28] sm:$0xff]   ;;  %v403_v10 = vld [vmem:[#allocation4 + $0x18] sm:$0xff]   ;;  %v397_v11 = vld [vmem:[#allocation2 + $0x30] sm:$0xff]  }
  0x29   :  { %347 = vmatprep.subr.bf16.mxu0 %v468_v0  ;;  %367 = vmatprep.subr.bf16.mxu1 %v468_v0  ;;  %v404_v12 = vld [vmem:[#allocation4 + $0x20] sm:$0xff]   ;;  %v398_v13 = vld [vmem:[#allocation2 + $0x38] sm:$0xff]   ;;  %v405_v14 = vld [vmem:[#allocation4 + $0x28] sm:$0xff]  }
  0x2a   :  { %v399_v15 = vld [vmem:[%s539_s0] sm:$0xff]   ;;  %v406_v16 = vld [vmem:[#allocation4 + $0x30] sm:$0xff]   ;;  %v407_v17 = vld [vmem:[#allocation4 + $0x38] sm:$0xff]  }
  0x2b   :  { %v308_v18 = vld [vmem:[%s541_s2] ss:$0 sm:$0xff] }
  0x2c   :  { %348 = vmatpush3.bf16.msra.mxu0 %v392_v2  ;;  %368 = vmatpush3.bf16.msra.mxu1 %v401_v6  ;;  %v318_v26 = vld [vmem:[%s543_s4] ss:$0 sm:$0xff] }
  0x2d   :  { %349 = vmatprep.subr.bf16.mxu0 %v468_v0  ;;  %369 = vmatprep.subr.bf16.mxu1 %v468_v0 }
  0x30   :  { %350 = vmatpush3.bf16.msra.mxu0 %v393_v3  ;;  %370 = vmatpush3.bf16.msra.mxu1 %v402_v8 }
  0x31   :  { %351 = vmatprep.subr.bf16.mxu0 %v468_v0  ;;  %371 = vmatprep.subr.bf16.mxu1 %v468_v0 }
  0x34   :  { %352 = vmatpush3.bf16.msra.mxu0 %v394_v5  ;;  %372 = vmatpush3.bf16.msra.mxu1 %v403_v10 }
  0x35   :  { %353 = vmatprep.subr.bf16.mxu0 %v468_v0  ;;  %373 = vmatprep.subr.bf16.mxu1 %v468_v0 }
  0x38   :  { %354 = vmatpush3.bf16.msra.mxu0 %v395_v7  ;;  %374 = vmatpush3.bf16.msra.mxu1 %v404_v12 }
  0x39   :  { %355 = vmatprep.subr.bf16.mxu0 %v468_v0  ;;  %375 = vmatprep.subr.bf16.mxu1 %v468_v0 }
  0x3c   :  { %356 = vmatpush3.bf16.msra.mxu0 %v396_v9  ;;  %376 = vmatpush3.bf16.msra.mxu1 %v405_v14 }
  0x3d   :  { %357 = vmatprep.subr.bf16.mxu0 %v468_v0  ;;  %377 = vmatprep.subr.bf16.mxu1 %v468_v0 }
  0x40   :  { %358 = vmatpush3.bf16.msra.mxu0 %v397_v11  ;;  %378 = vmatpush3.bf16.msra.mxu1 %v406_v16 }
  0x41   :  { %359 = vmatprep.subr.bf16.mxu0 %v468_v0  ;;  %379 = vmatprep.subr.bf16.mxu1 %v468_v0 }
  0x44   :  { %360 = vmatpush3.bf16.msra.mxu0 %v398_v13  ;;  %380 = vmatpush3.bf16.msra.mxu1 %v407_v17 }
  0x47   :  { %362 = vmatmul.mubr.bf16.vlgmr.msra.gmra.mrb[0].mxu0 %v399_v15 }
 0x11a   :  { %v162_v19 = vpop.f32.mrb[0].mxu0 }
 0x11b   :  { %v363_v20 = vpop.f32.mrb[1].mxu0  ;;  %v163_v22 = vadd.f32 %v308_v18, %v162_v19 }
 0x11c   :  { %v165_v21 = vpop.f32.mrb[2].mxu0 }
 0x11d   :  { %v166_v23 = vadd.f32 %v308_v18, %v165_v21  ;;  %v364_v24 = vpop.f32.mrb[3].mxu0 }
 0x11f   :  { %v169_v25 = vpack.c.bf16 %v166_v23, %v163_v22 }
 0x121   :  { %382 = vmatmul.mubr.bf16.vlgmr.msra.gmra.mrb[0].mxu1 %v169_v25 }
 0x1f4   :  { %v275_v27 = vpop.f32.mrb[0].mxu1 }
 0x1f5   :  { %v276_v28 = vadd.f32 %v318_v26, %v275_v27  ;;  %v383_v29 = vpop.f32.mrb[1].mxu1 }
 0x1f6   :  { %v278_v30 = vpop.f32.mrb[2].mxu1 }
 0x1f7   :  { %282 = vmax.xlane.f32.xlu0 %v276_v28  ;;  %v384_v31 = vpop.f32.mrb[3].mxu1  ;;  %v279_v32 = vadd.f32 %v318_v26, %v278_v30 }
 0x1fb   :  { %284 = vmax.xlane.f32.xlu0 %v279_v32 }
 0x284   :  { %v283_v33 = vpop.xlane.xlu0 %282 }
 0x285   :  { %v286_v34 = vsub.f32 %v276_v28, %v283_v33 }
 0x287   :  { %v288_v35 = vmul.f32 1.442695, %v286_v34 }
 0x288   :  { %v285_v36 = vpop.xlane.xlu0 %284 }
 0x289   :  { %408 = vpow2.f32 %v288_v35  ;;  %v287_v37 = vsub.f32 %v279_v32, %v285_v36 }
 0x28b   :  { %v290_v38 = vmul.f32 1.442695, %v287_v37 }
 0x28d   :  { %410 = vpow2.f32 %v290_v38 }
 0x293   :  { %v409_v39 = vpop.eup %408 }
 0x294   :  { %292 = vadd.xlane.f32.xlu1 %v409_v39 }
 0x297   :  { %v411_v40 = vpop.eup %410 }
 0x298   :  { %294 = vadd.xlane.f32.xlu1 %v411_v40 }
 0x321   :  { %v293_v41 = vpop.xlane.xlu1 %292 }
 0x322   :  { %412 = vrcp.f32 %v293_v41 }
 0x325   :  { %v295_v42 = vpop.xlane.xlu1 %294 }
 0x326   :  { %414 = vrcp.f32 %v295_v42 }
 0x32c   :  { %v413_v43 = vpop.eup %412 }
 0x32d   :  { %v298_v44 = vmul.f32 %v413_v43, %v409_v39 }
 0x32f   :  { %300 = vst [vmem:[%s544_s5] sm:$0xff] %v298_v44 }
 0x330   :  { %v415_v45 = vpop.eup %414 }
 0x331   :  { %v299_v46 = vmul.f32 %v415_v45, %v411_v40 }
 0x333   :  { %301 = vst [vmem:[%s544_s5 + $0x8] sm:$0xff] %v299_v46 }
 0x334   :  { %306 = vsyncpa [#allocation3], 1 }
 0x335   :  { %307 = vsyncpa [#allocation5], 1 }

</bundles_post_ra>
